<compile_context>
chip_gen: v6e
topology: v6e:2x2x1
jax: 0.10.0
libtpu: 0.0.40
codegen_flags: <defaults>
</compile_context>

<pallas_src>
import jax
import jax.numpy as jnp
from jax import lax
from jax.experimental import pallas as pl
from jax.experimental.pallas import tpu as pltpu

BN_EPS = 1e-5  # PyTorch BatchNorm1d default eps (eval mode, init running stats)


def _visual_stream_kernel(
    feat_ref,      # (1, S*M, NC) bf16   features for batch element b (channels last)
    w0_ref,        # (NC, K)      bf16   conv0 1x1 conv weight (transposed)
    b0_ref,        # (1, K)       f32    conv0 bias (row)
    wsa_ref,       # (1, K)              sa_net conv weight
    wsafc_t_ref,   # (M, M)              sa_net fc weight (transposed)
    wcwa_ref,      # (M, 1)              cwa_net conv weight (column)
    wcwafc_t_ref,  # (K, K)              cwa_net fc weight (transposed)
    wta_ref,       # (1, K)              ta_net conv weight
    wtafc_t_ref,   # (S, S)              ta_net fc weight (transposed)
    btafc_ref,     # (1, S)              ta_net fc bias (filled with 1.0)
    wfc_t_ref,     # (K, NCLS)           final fc weight (transposed)
    bfc_ref,       # (1, NCLS)           final fc bias
    logits_ref,    # (1, 1, NCLS)  per-b output block
    alpha_ref,     # (1, S, M)     per-b output block
    beta_ref,      # (1, S, K)     per-b output block
    gamma_ref,     # (1, 1, S)     per-b output block
):
    S = alpha_ref.shape[1]
    M = alpha_ref.shape[2]
    K = beta_ref.shape[2]
    bn = 1.0 / (1.0 + BN_EPS) ** 0.5  # eval-mode BN(weight=1,bias=0,mean=0,var=1)

    # conv0: 1x1 Conv1d(NC -> K) + BatchNorm1d(K) + ReLU, all S snippets in one
    # bf16 MXU matmul with f32 accumulation; K sits on the lane axis.
    f = jnp.dot(feat_ref[0], w0_ref[...],
                preferred_element_type=jnp.float32)               # (S*M, K)
    f = jnp.maximum((f + b0_ref[...]) * bn, 0.0)
    f3 = f.reshape(S, M, K)                                       # K stays on lanes

    # ---- spatial attention (sa_net): conv(K->1)+BN+tanh, fc(MxM), softmax*M ----
    hs = jnp.tanh(bn * jnp.sum(f3 * wsa_ref[...][None], axis=-1))  # (S, M) lane reduce
    hs = jnp.dot(hs, wsafc_t_ref[...], preferred_element_type=jnp.float32)
    a_s = jax.nn.softmax(hs, axis=-1) * M                          # (S, M)
    alpha_ref[...] = a_s[None]

    f_s = f3 * a_s[:, :, None]                                     # (S, M, K)

    # ---- channel-wise attention (cwa_net): conv(M->1)+BN+tanh, fc(KxK), softmax*K ----
    hc = jnp.tanh(bn * jnp.sum(f_s * wcwa_ref[...][None], axis=1))  # (S, K) sublane reduce
    hc = jnp.dot(hc, wcwafc_t_ref[...], preferred_element_type=jnp.float32)
    a_c = jax.nn.softmax(hc, axis=-1) * K                           # (S, K)
    beta_ref[...] = a_c[None]

    fsc = a_c * jnp.mean(f_s, axis=1)                               # (S, K)

    # ---- temporal attention (ta_net): conv(K->1)+BN+tanh, fc(SxS)+bias, relu ----
    ht = jnp.tanh(bn * jnp.sum(fsc * wta_ref[...], axis=-1, keepdims=True))   # (S, 1)
    at = jnp.sum(wtafc_t_ref[...] * ht, axis=0, keepdims=True) + btafc_ref[...]
    at = jnp.maximum(at, 0.0)                                       # (1, S)
    gamma_ref[...] = at[None]

    # ---- classifier ----
    fsct = jnp.dot(at, fsc, preferred_element_type=jnp.float32) * (1.0 / S)   # (1, K)
    logits_ref[...] = (jnp.dot(fsct, wfc_t_ref[...],
                               preferred_element_type=jnp.float32)
                       + bfc_ref[...])[None]


def visual_stream_attention(features, params):
    """features: (S, B, NC, M) f32 -> (logits (B, n_cls), alpha (S,B,M),
    beta (S,B,K), gamma (B,S))  — matches VisualStream.forward outputs."""
    S, B, NC, M = features.shape
    K = params["w0"].shape[0]
    NCLS = params["wfc_t"].shape[1]
    f32 = jnp.float32

    # Channels-last, S folded into the matmul M-dim, bf16 for the MXU.
    feat_t = jnp.transpose(features, (1, 0, 3, 2)).reshape(B, S * M, NC)
    feat_t = feat_t.astype(jnp.bfloat16)
    w0_t = params["w0"].T.astype(jnp.bfloat16)     # (NC, K)
    wcwa_col = params["wcwa"].T                    # (M, 1)

    def const_spec(shape):
        return pl.BlockSpec(shape, lambda b: (0,) * len(shape))

    in_specs = [
        pl.BlockSpec((1, S * M, NC), lambda b: (b, 0, 0)),
        const_spec((NC, K)),
        const_spec((1, K)),
        const_spec((1, K)),
        const_spec((M, M)),
        const_spec((M, 1)),
        const_spec((K, K)),
        const_spec((1, K)),
        const_spec((S, S)),
        const_spec((1, S)),
        const_spec((K, NCLS)),
        const_spec((1, NCLS)),
    ]
    out_specs = (
        pl.BlockSpec((1, 1, NCLS), lambda b: (b, 0, 0)),   # logits, per-b block
        pl.BlockSpec((1, S, M), lambda b: (b, 0, 0)),      # alpha, (B,S,M) layout
        pl.BlockSpec((1, S, K), lambda b: (b, 0, 0)),      # beta,  (B,S,K) layout
        pl.BlockSpec((1, 1, S), lambda b: (b, 0, 0)),      # gamma, per-b block
    )
    out_shape = (
        jax.ShapeDtypeStruct((B, 1, NCLS), f32),
        jax.ShapeDtypeStruct((B, S, M), f32),
        jax.ShapeDtypeStruct((B, S, K), f32),
        jax.ShapeDtypeStruct((B, 1, S), f32),
    )

    logits3, alpha_bsm, beta_bsk, gamma3 = pl.pallas_call(
        _visual_stream_kernel,
        out_shape=out_shape,
        grid_spec=pltpu.PrefetchScalarGridSpec(
            num_scalar_prefetch=0,
            grid=(B,),
            in_specs=in_specs,
            out_specs=out_specs,
        ),
        compiler_params=pltpu.CompilerParams(
            dimension_semantics=("parallel",)),
    )(
        feat_t, w0_t, params["b0"], params["wsa"], params["wsafc_t"],
        wcwa_col, params["wcwafc_t"], params["wta"], params["wtafc_t"],
        params["btafc"], params["wfc_t"], params["bfc"],
    )
    logits = logits3[:, 0, :]
    gamma = gamma3[:, 0, :]
    alpha = jnp.transpose(alpha_bsm, (1, 0, 2))   # == As.view(seq_len, batch, m)
    beta = jnp.transpose(beta_bsk, (1, 0, 2))     # == Ac.view(seq_len, batch, k)
    return logits, alpha, beta, gamma


def init_params(key, *, nc, k, m, seq_len, n_classes):
    """Deterministic synthetic init (shapes from VisualStream.__init__).
    Conv weights use kaiming-like scales; ta_net fc bias is filled with 1.0;
    linear weights are stored pre-transposed where the kernel wants W^T."""
    f32 = jnp.float32
    ks = jax.random.split(key, 9)
    return dict(
        w0=jax.random.normal(ks[0], (k, nc), f32) * (2.0 / k) ** 0.5,
        b0=0.01 * jax.random.normal(ks[1], (1, k), f32),
        wsa=0.1 * jax.random.normal(ks[2], (1, k), f32),
        wsafc_t=jax.random.normal(ks[3], (m, m), f32) * (1.0 / m ** 0.5),
        wcwa=0.1 * jax.random.normal(ks[4], (1, m), f32),
        wcwafc_t=jax.random.normal(ks[5], (k, k), f32) * (1.0 / k ** 0.5),
        wta=0.1 * jax.random.normal(ks[6], (1, k), f32),
        wtafc_t=jax.random.normal(ks[7], (seq_len, seq_len), f32) * (1.0 / seq_len ** 0.5),
        btafc=jnp.ones((1, seq_len), f32),                       # .fill(1.0)
        wfc_t=jax.random.normal(ks[8], (k, n_classes), f32) * (1.0 / k ** 0.5),
        bfc=jnp.zeros((1, n_classes), f32),
    )


def reference_forward(features, params):
    """Pure-JAX f32 reference replicating the PyTorch/Jittor forward math."""
    S, B, NC, M = features.shape
    K = params["w0"].shape[0]
    bn = 1.0 / (1.0 + BN_EPS) ** 0.5
    hi = lax.Precision.HIGHEST
    x = features.reshape(S * B, NC, M)
    f = jnp.einsum("kc,ncm->nkm", params["w0"], x, precision=hi) \
        + params["b0"].reshape(1, K, 1)
    f = jax.nn.relu(f * bn)
    hs = jnp.tanh(bn * jnp.einsum("k,nkm->nm", params["wsa"][0], f, precision=hi))
    hs = jnp.matmul(hs, params["wsafc_t"], precision=hi)
    a_s = jax.nn.softmax(hs, axis=1) * M
    alpha = a_s.reshape(S, B, M)
    f_s = f * a_s[:, None, :]
    hc = jnp.tanh(bn * jnp.einsum("m,nkm->nk", params["wcwa"][0], f_s, precision=hi))
    hc = jnp.matmul(hc, params["wcwafc_t"], precision=hi)
    a_c = jax.nn.softmax(hc, axis=1) * K
    beta = a_c.reshape(S, B, K)
    fsc = jnp.mean(f_s * a_c[:, :, None], axis=2)                # (N, K)
    fsc = fsc.reshape(S, B, K).transpose(1, 2, 0)                # (B, K, S)
    ht = jnp.tanh(bn * jnp.einsum("k,bks->bs", params["wta"][0], fsc, precision=hi))
    a_t = jax.nn.relu(jnp.matmul(ht, params["wtafc_t"], precision=hi) + params["btafc"])
    gamma = a_t
    fsct = jnp.mean(fsc * a_t[:, None, :], axis=2)               # (B, K)
    logits = jnp.matmul(fsct, params["wfc_t"], precision=hi) + params["bfc"]
    return logits, alpha, beta, gamma


if __name__ == "__main__":
    SEQ_LEN, BATCH = 4, 2
    # scaled-down hyperparameters (real model: nc=2048, k=512, m=16=hw*hw)
    NC, K, M, N_CLASSES = 256, 128, 16, 8

    key = jax.random.PRNGKey(0)
    k_feat, k_param = jax.random.split(key)
    params = init_params(k_param, nc=NC, k=K, m=M, seq_len=SEQ_LEN,
                         n_classes=N_CLASSES)
    # Post-backbone feature map (stands in for the frozen ResNet-101 output).
    features = jax.random.normal(k_feat, (SEQ_LEN, BATCH, NC, M), jnp.float32)

    outs = jax.jit(visual_stream_attention)(features, params)
    outs = jax.block_until_ready(outs)

    refs = reference_forward(features, params)
    # conv0 runs with bf16 inputs (f32 accumulation) in the kernel, so allow a
    # slightly looser absolute tolerance vs. the pure-f32 reference.
    for name, got, want in zip(("logits", "alpha", "beta", "gamma"), outs, refs):
        assert got.shape == want.shape, (name, got.shape, want.shape)
        assert bool(jnp.allclose(got, want, rtol=5e-2, atol=1e-1)), (
            name, float(jnp.max(jnp.abs(got - want))))
    print("KERNEL_OK")
</pallas_src>

<mosaic_0001>
module attributes {stable_mosaic.version = 11 : i64} {
  func.func @_visual_stream_kernel(%arg0: i32, %arg1: memref<1x64x256xbf16, #tpu.memory_space<vmem>>, %arg2: memref<256x128xbf16, #tpu.memory_space<vmem>>, %arg3: memref<1x128xf32, #tpu.memory_space<vmem>>, %arg4: memref<1x128xf32, #tpu.memory_space<vmem>>, %arg5: memref<16x16xf32, #tpu.memory_space<vmem>>, %arg6: memref<16x1xf32, #tpu.memory_space<vmem>>, %arg7: memref<128x128xf32, #tpu.memory_space<vmem>>, %arg8: memref<1x128xf32, #tpu.memory_space<vmem>>, %arg9: memref<4x4xf32, #tpu.memory_space<vmem>>, %arg10: memref<1x4xf32, #tpu.memory_space<vmem>>, %arg11: memref<128x8xf32, #tpu.memory_space<vmem>>, %arg12: memref<1x8xf32, #tpu.memory_space<vmem>>, %arg13: memref<1x1x8xf32, #tpu.memory_space<vmem>>, %arg14: memref<1x4x16xf32, #tpu.memory_space<vmem>>, %arg15: memref<1x4x128xf32, #tpu.memory_space<vmem>>, %arg16: memref<1x1x4xf32, #tpu.memory_space<vmem>>) attributes {dimension_semantics = [#tpu.dimension_semantics<parallel>], iteration_bounds = array<i64: 2>, scalar_prefetch = 0 : i64, scratch_operands = 0 : i64, tpu.core_type = #tpu.core_type<tc>, window_params = [{transform_indices = @transform_0, window_bounds = array<i64: 1, 64, 256>}, {pipeline_mode = #tpu.pipeline_mode<synchronous>, transform_indices = @transform_1, window_bounds = array<i64: 256, 128>}, {pipeline_mode = #tpu.pipeline_mode<synchronous>, transform_indices = @transform_2, window_bounds = array<i64: 1, 128>}, {pipeline_mode = #tpu.pipeline_mode<synchronous>, transform_indices = @transform_3, window_bounds = array<i64: 1, 128>}, {pipeline_mode = #tpu.pipeline_mode<synchronous>, transform_indices = @transform_4, window_bounds = array<i64: 16, 16>}, {pipeline_mode = #tpu.pipeline_mode<synchronous>, transform_indices = @transform_5, window_bounds = array<i64: 16, 1>}, {pipeline_mode = #tpu.pipeline_mode<synchronous>, transform_indices = @transform_6, window_bounds = array<i64: 128, 128>}, {pipeline_mode = #tpu.pipeline_mode<synchronous>, transform_indices = @transform_7, window_bounds = array<i64: 1, 128>}, {pipeline_mode = #tpu.pipeline_mode<synchronous>, transform_indices = @transform_8, window_bounds = array<i64: 4, 4>}, {pipeline_mode = #tpu.pipeline_mode<synchronous>, transform_indices = @transform_9, window_bounds = array<i64: 1, 4>}, {pipeline_mode = #tpu.pipeline_mode<synchronous>, transform_indices = @transform_10, window_bounds = array<i64: 128, 8>}, {pipeline_mode = #tpu.pipeline_mode<synchronous>, transform_indices = @transform_11, window_bounds = array<i64: 1, 8>}, {transform_indices = @transform_12, window_bounds = array<i64: 1, 1, 8>}, {transform_indices = @transform_13, window_bounds = array<i64: 1, 4, 16>}, {transform_indices = @transform_14, window_bounds = array<i64: 1, 4, 128>}, {transform_indices = @transform_15, window_bounds = array<i64: 1, 1, 4>}]} {
    %c0 = arith.constant 0 : index
    %c0_0 = arith.constant 0 : index
    %c0_1 = arith.constant 0 : index
    %0 = vector.load %arg1[%c0, %c0_0, %c0_1] : memref<1x64x256xbf16, #tpu.memory_space<vmem>>, vector<1x64x256xbf16>
    %1 = vector.shape_cast %0 : vector<1x64x256xbf16> to vector<64x256xbf16>
    %c0_2 = arith.constant 0 : index
    %c0_3 = arith.constant 0 : index
    %2 = vector.load %arg2[%c0_2, %c0_3] : memref<256x128xbf16, #tpu.memory_space<vmem>>, vector<256x128xbf16>
    %cst = arith.constant dense<0.000000e+00> : vector<64x128xf32>
    %3 = tpu.matmul %1, %2, %cst {dimension_numbers = #tpu.dot_dimension_numbers<[1], [0], [0], [1], [0, 0, 1, 1], [], []>} : vector<64x256xbf16>, vector<256x128xbf16>, vector<64x128xf32> -> vector<64x128xf32>
    %c0_4 = arith.constant 0 : index
    %c0_5 = arith.constant 0 : index
    %4 = vector.load %arg3[%c0_4, %c0_5] : memref<1x128xf32, #tpu.memory_space<vmem>>, vector<1x128xf32>
    %5 = vector.broadcast %4 : vector<1x128xf32> to vector<64x128xf32>
    %6 = arith.addf %3, %5 : vector<64x128xf32>
    %cst_6 = arith.constant 0.999994993 : f32
    %7 = vector.broadcast %cst_6 : f32 to vector<64x128xf32>
    %8 = arith.mulf %6, %7 : vector<64x128xf32>
    %cst_7 = arith.constant 0.000000e+00 : f32
    %9 = vector.broadcast %cst_7 : f32 to vector<64x128xf32>
    %10 = arith.maximumf %8, %9 : vector<64x128xf32>
    %11 = vector.shape_cast %10 : vector<64x128xf32> to vector<4x16x128xf32>
    %c0_8 = arith.constant 0 : index
    %c0_9 = arith.constant 0 : index
    %12 = vector.load %arg4[%c0_8, %c0_9] : memref<1x128xf32, #tpu.memory_space<vmem>>, vector<1x128xf32>
    %13 = vector.shape_cast %12 : vector<1x128xf32> to vector<1x1x128xf32>
    %14 = vector.broadcast %13 : vector<1x1x128xf32> to vector<4x16x128xf32>
    %15 = arith.mulf %11, %14 : vector<4x16x128xf32>
    %cst_10 = arith.constant dense<0.000000e+00> : vector<4x16xf32>
    %16 = vector.multi_reduction <add>, %15, %cst_10 [2] : vector<4x16x128xf32> to vector<4x16xf32>
    %cst_11 = arith.constant 0.999994993 : f32
    %17 = vector.broadcast %cst_11 : f32 to vector<4x16xf32>
    %18 = arith.mulf %17, %16 : vector<4x16xf32>
    %19 = math.tanh %18 : vector<4x16xf32>
    %c0_12 = arith.constant 0 : index
    %c0_13 = arith.constant 0 : index
    %20 = vector.load %arg5[%c0_12, %c0_13] : memref<16x16xf32, #tpu.memory_space<vmem>>, vector<16x16xf32>
    %cst_14 = arith.constant dense<0.000000e+00> : vector<4x16xf32>
    %21 = tpu.matmul %19, %20, %cst_14 {dimension_numbers = #tpu.dot_dimension_numbers<[1], [0], [0], [1], [0, 0, 1, 1], [], []>} : vector<4x16xf32>, vector<16x16xf32>, vector<4x16xf32> -> vector<4x16xf32>
    %cst_15 = arith.constant dense<0xFF800000> : vector<4xf32>
    %22 = vector.multi_reduction <maximumf>, %21, %cst_15 [1] : vector<4x16xf32> to vector<4xf32>
    %cst_16 = arith.constant 0xFF800000 : f32
    %23 = vector.broadcast %cst_16 : f32 to vector<4xf32>
    %24 = arith.maximumf %23, %22 : vector<4xf32>
    %25 = vector.shape_cast %24 : vector<4xf32> to vector<4x1xf32>
    %26 = vector.broadcast %25 : vector<4x1xf32> to vector<4x16xf32>
    %27 = arith.subf %21, %26 : vector<4x16xf32>
    %28 = math.exp %27 : vector<4x16xf32>
    %cst_17 = arith.constant dense<0.000000e+00> : vector<4xf32>
    %29 = vector.multi_reduction <add>, %28, %cst_17 [1] : vector<4x16xf32> to vector<4xf32>
    %30 = vector.shape_cast %29 : vector<4xf32> to vector<4x1xf32>
    %31 = vector.broadcast %30 : vector<4x1xf32> to vector<4x16xf32>
    %32 = arith.divf %28, %31 : vector<4x16xf32>
    %cst_18 = arith.constant 1.600000e+01 : f32
    %33 = vector.broadcast %cst_18 : f32 to vector<4x16xf32>
    %34 = arith.mulf %32, %33 : vector<4x16xf32>
    %35 = vector.shape_cast %34 : vector<4x16xf32> to vector<1x4x16xf32>
    %c0_19 = arith.constant 0 : index
    %c0_20 = arith.constant 0 : index
    %c0_21 = arith.constant 0 : index
    %36 = vector.load %arg14[%c0_19, %c0_20, %c0_21] : memref<1x4x16xf32, #tpu.memory_space<vmem>>, vector<1x4x16xf32>
    tpu.vector_store %arg14[%c0_19, %c0_20, %c0_21], %35 {strides = array<i32>} : memref<1x4x16xf32, #tpu.memory_space<vmem>>, vector<1x4x16xf32>,
    %37 = vector.shape_cast %34 : vector<4x16xf32> to vector<4x16x1xf32>
    %38 = vector.broadcast %37 : vector<4x16x1xf32> to vector<4x16x128xf32>
    %39 = arith.mulf %11, %38 : vector<4x16x128xf32>
    %c0_22 = arith.constant 0 : index
    %c0_23 = arith.constant 0 : index
    %40 = vector.load %arg6[%c0_22, %c0_23] : memref<16x1xf32, #tpu.memory_space<vmem>>, vector<16x1xf32>
    %41 = vector.shape_cast %40 : vector<16x1xf32> to vector<1x16x1xf32>
    %42 = vector.broadcast %41 : vector<1x16x1xf32> to vector<4x16x128xf32>
    %43 = arith.mulf %39, %42 : vector<4x16x128xf32>
    %cst_24 = arith.constant dense<0.000000e+00> : vector<4x128xf32>
    %44 = vector.multi_reduction <add>, %43, %cst_24 [1] : vector<4x16x128xf32> to vector<4x128xf32>
    %cst_25 = arith.constant 0.999994993 : f32
    %45 = vector.broadcast %cst_25 : f32 to vector<4x128xf32>
    %46 = arith.mulf %45, %44 : vector<4x128xf32>
    %47 = math.tanh %46 : vector<4x128xf32>
    %c0_26 = arith.constant 0 : index
    %c0_27 = arith.constant 0 : index
    %48 = vector.load %arg7[%c0_26, %c0_27] : memref<128x128xf32, #tpu.memory_space<vmem>>, vector<128x128xf32>
    %cst_28 = arith.constant dense<0.000000e+00> : vector<4x128xf32>
    %49 = tpu.matmul %47, %48, %cst_28 {dimension_numbers = #tpu.dot_dimension_numbers<[1], [0], [0], [1], [0, 0, 1, 1], [], []>} : vector<4x128xf32>, vector<128x128xf32>, vector<4x128xf32> -> vector<4x128xf32>
    %cst_29 = arith.constant dense<0xFF800000> : vector<4xf32>
    %50 = vector.multi_reduction <maximumf>, %49, %cst_29 [1] : vector<4x128xf32> to vector<4xf32>
    %cst_30 = arith.constant 0xFF800000 : f32
    %51 = vector.broadcast %cst_30 : f32 to vector<4xf32>
    %52 = arith.maximumf %51, %50 : vector<4xf32>
    %53 = vector.shape_cast %52 : vector<4xf32> to vector<4x1xf32>
    %54 = vector.broadcast %53 : vector<4x1xf32> to vector<4x128xf32>
    %55 = arith.subf %49, %54 : vector<4x128xf32>
    %56 = math.exp %55 : vector<4x128xf32>
    %cst_31 = arith.constant dense<0.000000e+00> : vector<4xf32>
    %57 = vector.multi_reduction <add>, %56, %cst_31 [1] : vector<4x128xf32> to vector<4xf32>
    %58 = vector.shape_cast %57 : vector<4xf32> to vector<4x1xf32>
    %59 = vector.broadcast %58 : vector<4x1xf32> to vector<4x128xf32>
    %60 = arith.divf %56, %59 : vector<4x128xf32>
    %cst_32 = arith.constant 1.280000e+02 : f32
    %61 = vector.broadcast %cst_32 : f32 to vector<4x128xf32>
    %62 = arith.mulf %60, %61 : vector<4x128xf32>
    %63 = vector.shape_cast %62 : vector<4x128xf32> to vector<1x4x128xf32>
    %c0_33 = arith.constant 0 : index
    %c0_34 = arith.constant 0 : index
    %c0_35 = arith.constant 0 : index
    %64 = vector.load %arg15[%c0_33, %c0_34, %c0_35] : memref<1x4x128xf32, #tpu.memory_space<vmem>>, vector<1x4x128xf32>
    tpu.vector_store %arg15[%c0_33, %c0_34, %c0_35], %63 {strides = array<i32>} : memref<1x4x128xf32, #tpu.memory_space<vmem>>, vector<1x4x128xf32>,
    %cst_36 = arith.constant dense<0.000000e+00> : vector<4x128xf32>
    %65 = vector.multi_reduction <add>, %39, %cst_36 [1] : vector<4x16x128xf32> to vector<4x128xf32>
    %cst_37 = arith.constant 1.600000e+01 : f32
    %66 = vector.broadcast %cst_37 : f32 to vector<4x128xf32>
    %67 = arith.divf %65, %66 : vector<4x128xf32>
    %68 = arith.mulf %62, %67 : vector<4x128xf32>
    %c0_38 = arith.constant 0 : index
    %c0_39 = arith.constant 0 : index
    %69 = vector.load %arg8[%c0_38, %c0_39] : memref<1x128xf32, #tpu.memory_space<vmem>>, vector<1x128xf32>
    %70 = vector.broadcast %69 : vector<1x128xf32> to vector<4x128xf32>
    %71 = arith.mulf %68, %70 : vector<4x128xf32>
    %cst_40 = arith.constant dense<0.000000e+00> : vector<4xf32>
    %72 = vector.multi_reduction <add>, %71, %cst_40 [1] : vector<4x128xf32> to vector<4xf32>
    %73 = vector.shape_cast %72 : vector<4xf32> to vector<4x1xf32>
    %cst_41 = arith.constant 0.999994993 : f32
    %74 = vector.broadcast %cst_41 : f32 to vector<4x1xf32>
    %75 = arith.mulf %74, %73 : vector<4x1xf32>
    %76 = math.tanh %75 : vector<4x1xf32>
    %c0_42 = arith.constant 0 : index
    %c0_43 = arith.constant 0 : index
    %77 = vector.load %arg9[%c0_42, %c0_43] : memref<4x4xf32, #tpu.memory_space<vmem>>, vector<4x4xf32>
    %78 = vector.broadcast %76 : vector<4x1xf32> to vector<4x4xf32>
    %79 = arith.mulf %77, %78 : vector<4x4xf32>
    %cst_44 = arith.constant dense<0.000000e+00> : vector<4xf32>
    %80 = vector.multi_reduction <add>, %79, %cst_44 [0] : vector<4x4xf32> to vector<4xf32>
    %81 = vector.shape_cast %80 : vector<4xf32> to vector<1x4xf32>
    %c0_45 = arith.constant 0 : index
    %c0_46 = arith.constant 0 : index
    %82 = vector.load %arg10[%c0_45, %c0_46] : memref<1x4xf32, #tpu.memory_space<vmem>>, vector<1x4xf32>
    %83 = arith.addf %81, %82 : vector<1x4xf32>
    %cst_47 = arith.constant 0.000000e+00 : f32
    %84 = vector.broadcast %cst_47 : f32 to vector<1x4xf32>
    %85 = arith.maximumf %83, %84 : vector<1x4xf32>
    %86 = vector.shape_cast %85 : vector<1x4xf32> to vector<1x1x4xf32>
    %c0_48 = arith.constant 0 : index
    %c0_49 = arith.constant 0 : index
    %c0_50 = arith.constant 0 : index
    %87 = vector.load %arg16[%c0_48, %c0_49, %c0_50] : memref<1x1x4xf32, #tpu.memory_space<vmem>>, vector<1x1x4xf32>
    tpu.vector_store %arg16[%c0_48, %c0_49, %c0_50], %86 {strides = array<i32>} : memref<1x1x4xf32, #tpu.memory_space<vmem>>, vector<1x1x4xf32>,
    %cst_51 = arith.constant dense<0.000000e+00> : vector<1x128xf32>
    %88 = tpu.matmul %85, %68, %cst_51 {dimension_numbers = #tpu.dot_dimension_numbers<[1], [0], [0], [1], [0, 0, 1, 1], [], []>} : vector<1x4xf32>, vector<4x128xf32>, vector<1x128xf32> -> vector<1x128xf32>
    %cst_52 = arith.constant 2.500000e-01 : f32
    %89 = vector.broadcast %cst_52 : f32 to vector<1x128xf32>
    %90 = arith.mulf %88, %89 : vector<1x128xf32>
    %c0_53 = arith.constant 0 : index
    %c0_54 = arith.constant 0 : index
    %91 = vector.load %arg11[%c0_53, %c0_54] : memref<128x8xf32, #tpu.memory_space<vmem>>, vector<128x8xf32>
    %cst_55 = arith.constant dense<0.000000e+00> : vector<1x8xf32>
    %92 = tpu.matmul %90, %91, %cst_55 {dimension_numbers = #tpu.dot_dimension_numbers<[1], [0], [0], [1], [0, 0, 1, 1], [], []>} : vector<1x128xf32>, vector<128x8xf32>, vector<1x8xf32> -> vector<1x8xf32>
    %c0_56 = arith.constant 0 : index
    %c0_57 = arith.constant 0 : index
    %93 = vector.load %arg12[%c0_56, %c0_57] : memref<1x8xf32, #tpu.memory_space<vmem>>, vector<1x8xf32>
    %94 = arith.addf %92, %93 : vector<1x8xf32>
    %95 = vector.shape_cast %94 : vector<1x8xf32> to vector<1x1x8xf32>
    %c0_58 = arith.constant 0 : index
    %c0_59 = arith.constant 0 : index
    %c0_60 = arith.constant 0 : index
    %96 = vector.load %arg13[%c0_58, %c0_59, %c0_60] : memref<1x1x8xf32, #tpu.memory_space<vmem>>, vector<1x1x8xf32>
    tpu.vector_store %arg13[%c0_58, %c0_59, %c0_60], %95 {strides = array<i32>} : memref<1x1x8xf32, #tpu.memory_space<vmem>>, vector<1x1x8xf32>,
    return
  }
  func.func @transform_0(%arg0: i32) -> (i32, i32, i32) {
    %c0_i32 = arith.constant 0 : i32
    %c0_i32_0 = arith.constant 0 : i32
    %c0_i32_1 = arith.constant 0 : i32
    return %arg0, %c0_i32, %c0_i32_0 : i32, i32, i32
  }
  func.func @transform_1(%arg0: i32) -> (i32, i32) {
    %c0_i32 = arith.constant 0 : i32
    %c0_i32_0 = arith.constant 0 : i32
    %c0_i32_1 = arith.constant 0 : i32
    return %c0_i32, %c0_i32_0 : i32, i32
  }
  func.func @transform_2(%arg0: i32) -> (i32, i32) {
    %c0_i32 = arith.constant 0 : i32
    %c0_i32_0 = arith.constant 0 : i32
    %c0_i32_1 = arith.constant 0 : i32
    return %c0_i32, %c0_i32_0 : i32, i32
  }
  func.func @transform_3(%arg0: i32) -> (i32, i32) {
    %c0_i32 = arith.constant 0 : i32
    %c0_i32_0 = arith.constant 0 : i32
    %c0_i32_1 = arith.constant 0 : i32
    return %c0_i32, %c0_i32_0 : i32, i32
  }
  func.func @transform_4(%arg0: i32) -> (i32, i32) {
    %c0_i32 = arith.constant 0 : i32
    %c0_i32_0 = arith.constant 0 : i32
    %c0_i32_1 = arith.constant 0 : i32
    return %c0_i32, %c0_i32_0 : i32, i32
  }
  func.func @transform_5(%arg0: i32) -> (i32, i32) {
    %c0_i32 = arith.constant 0 : i32
    %c0_i32_0 = arith.constant 0 : i32
    %c0_i32_1 = arith.constant 0 : i32
    return %c0_i32, %c0_i32_0 : i32, i32
  }
  func.func @transform_6(%arg0: i32) -> (i32, i32) {
    %c0_i32 = arith.constant 0 : i32
    %c0_i32_0 = arith.constant 0 : i32
    %c0_i32_1 = arith.constant 0 : i32
    return %c0_i32, %c0_i32_0 : i32, i32
  }
  func.func @transform_7(%arg0: i32) -> (i32, i32) {
    %c0_i32 = arith.constant 0 : i32
    %c0_i32_0 = arith.constant 0 : i32
    %c0_i32_1 = arith.constant 0 : i32
    return %c0_i32, %c0_i32_0 : i32, i32
  }
  func.func @transform_8(%arg0: i32) -> (i32, i32) {
    %c0_i32 = arith.constant 0 : i32
    %c0_i32_0 = arith.constant 0 : i32
    %c0_i32_1 = arith.constant 0 : i32
    return %c0_i32, %c0_i32_0 : i32, i32
  }
  func.func @transform_9(%arg0: i32) -> (i32, i32) {
    %c0_i32 = arith.constant 0 : i32
    %c0_i32_0 = arith.constant 0 : i32
    %c0_i32_1 = arith.constant 0 : i32
    return %c0_i32, %c0_i32_0 : i32, i32
  }
  func.func @transform_10(%arg0: i32) -> (i32, i32) {
    %c0_i32 = arith.constant 0 : i32
    %c0_i32_0 = arith.constant 0 : i32
    %c0_i32_1 = arith.constant 0 : i32
    return %c0_i32, %c0_i32_0 : i32, i32
  }
  func.func @transform_11(%arg0: i32) -> (i32, i32) {
    %c0_i32 = arith.constant 0 : i32
    %c0_i32_0 = arith.constant 0 : i32
    %c0_i32_1 = arith.constant 0 : i32
    return %c0_i32, %c0_i32_0 : i32, i32
  }
  func.func @transform_12(%arg0: i32) -> (i32, i32, i32) {
    %c0_i32 = arith.constant 0 : i32
    %c0_i32_0 = arith.constant 0 : i32
    %c0_i32_1 = arith.constant 0 : i32
    return %arg0, %c0_i32, %c0_i32_0 : i32, i32, i32
  }
  func.func @transform_13(%arg0: i32) -> (i32, i32, i32) {
    %c0_i32 = arith.constant 0 : i32
    %c0_i32_0 = arith.constant 0 : i32
    %c0_i32_1 = arith.constant 0 : i32
    return %arg0, %c0_i32, %c0_i32_0 : i32, i32, i32
  }
  func.func @transform_14(%arg0: i32) -> (i32, i32, i32) {
    %c0_i32 = arith.constant 0 : i32
    %c0_i32_0 = arith.constant 0 : i32
    %c0_i32_1 = arith.constant 0 : i32
    return %arg0, %c0_i32, %c0_i32_0 : i32, i32, i32
  }
  func.func @transform_15(%arg0: i32) -> (i32, i32, i32) {
    %c0_i32 = arith.constant 0 : i32
    %c0_i32_0 = arith.constant 0 : i32
    %c0_i32_1 = arith.constant 0 : i32
    return %arg0, %c0_i32, %c0_i32_0 : i32, i32, i32
  }
}

</mosaic_0001>

<bundles_post_ra>
// kernel: visual_stream_attention.1
= control target key start
LH: loop header
LB: loop body
LE: loop exit
PB: predicated region body
PF: predicated region fallthrough
CT: control target
= control target key end

     0   :  { %s2536_s0 = inlined_call_operand.vmem [shape: bf16[2,64,256], index: 0, kind: input, shape index: {}]   ;;  %s2537_s1 = inlined_call_operand.vmem [shape: bf16[256,128], index: 1, kind: input, shape index: {}]   ;;  %s2538_s2 = inlined_call_operand.vmem [shape: f32[1,128], index: 2, kind: input, shape index: {}]   ;;  %s2539_s3 = inlined_call_operand.vmem [shape: f32[1,128], index: 3, kind: input, shape index: {}]   ;;  %s2540_s4 = inlined_call_operand.vmem [shape: f32[16,16], index: 4, kind: input, shape index: {}]   ;;  %s2541_s5 = inlined_call_operand.vmem [shape: f32[16,1], index: 5, kind: input, shape index: {}]   ;;  %s2542_s6 = inlined_call_operand.vmem [shape: f32[128,128], index: 6, kind: input, shape index: {}]   ;;  %s2543_s7 = inlined_call_operand.vmem [shape: f32[1,128], index: 7, kind: input, shape index: {}]   ;;  %s2544_s8 = inlined_call_operand.vmem [shape: f32[4,4], index: 8, kind: input, shape index: {}]   ;;  %s2545_s9 = inlined_call_operand.vmem [shape: f32[1,4], index: 9, kind: input, shape index: {}]   ;;  %s2546_s10 = inlined_call_operand.vmem [shape: f32[128,8], index: 10, kind: input, shape index: {}]   ;;  %s2547_s11 = inlined_call_operand.vmem [shape: f32[1,8], index: 11, kind: input, shape index: {}]   ;;  %s2548_s12 = inlined_call_operand.hbm [shape: f32[2,1,8], index: 12, kind: output, shape index: {0}]   ;;  %s2549_s13 = inlined_call_operand.vmem [shape: f32[2,4,16], index: 13, kind: output, shape index: {1}]   ;;  %s2550_s14 = inlined_call_operand.vmem [shape: f32[2,4,128], index: 14, kind: output, shape index: {2}]   ;;  %s2551_s15 = inlined_call_operand.hbm [shape: f32[2,1,4], index: 15, kind: output, shape index: {3}]  }
   0x1   :  { %2558 = sst [smem:[#allocation13_spill]] %s2536_s0 }
   0x2   :  { %2559 = sst [smem:[#allocation14_spill]] %s2537_s1 }
   0x3   :  { %2560 = sst [smem:[#allocation15_spill]] %s2538_s2 }
   0x4   :  { %21 = vsyncpa [#allocation3], 0 }
   0x5   :  { %23 = vsyncpa [#allocation3 + $0x1], 0 }
   0x6   :  { %24 = vsyncpa [#allocation5], 0 }
   0x7   :  { %26 = vsyncpa [#allocation5 + $0x1], 0  ;;  %s2097_s18 = smov 0   ;;  %s2099_s19 = smov 0  }
   0x8   :  { %s2101_s20 = smov 0   ;;  %s2103_s21 = smov 0  }
   0x9 LB: > { %2561 = sst [smem:[#allocation8_spill]] %s1998_s18  ;;  %s2118_s22 = sadd.s32 4294967295, %s2010_s21   ;;  %s2010_s21 = sphi %s2103_s21, %s2574_s21   ;;  %s2006_s20 = sphi %s2101_s20, %s2576_s20   ;;  %s2002_s19 = sphi %s2099_s19, %s2578_s19   ;;  %s1998_s18 = sphi %s2097_s18, %s2577_s18  }
   0xa   : > { %2562 = sst [smem:[#allocation9_spill]] %s2006_s20  ;;  %s1605_s23 = sadd.s32 4294967294, %s2010_s21  }
   0xb   : > { %s2122_s24 = sadd.s32 1, %s2010_s21   ;;  %s296_s25 = sadd.s32 1, %s2006_s20 }
   0xc   : > { %2563 = sst [smem:[#allocation10_spill]] %s2122_s24  ;;  %s293_s26 = ssub.s32 %s2010_s21, %s2122_s24 }
   0xd   : > { %p306_p0 = scmp.ne.s32.totalorder %s2006_s20, %s2002_s19  ;;  %p294_p1 = scmp.eq.s32.totalorder %s293_s26, 0 }
   0xe   : > { %p307_p2 = scmp.eq.s32.totalorder %s2118_s22, 1  ;;  %p312_p3 = scmp.ne.s32.totalorder %s2002_s19, %s1998_s18 }
   0xf   : > { %p313_p4 = scmp.eq.s32.totalorder %s1605_s23, 1  ;;  %p1608_p7 = scmp.ge.s32.totalorder %s2010_s21, 1 }
  0x10   : > { %s2133_s27 = scalar_select %p294_p1, %s2006_s20, %s296_s25  }
  0x11   : > { %p2135_p5 = por %p307_p2, %p306_p0  ;;  %p2139_p6 = por %p313_p4, %p312_p3 }
  0x12   : > { %2564 = sst [smem:[#allocation11_spill]] %s2133_s27  ;;  %p450_p8 = scmp.lt.s32.totalorder %s2010_s21, 3 }
  0x13   : > { %s2566_s29 = scalar_select %p2139_p6, 1, 0 }
  0x14   : > { %p451_p9 = pnand %p1608_p7, %p450_p8 }
  0x15   : > { %2567 = sst [smem:[#allocation12_spill]] %s2566_s29  ;;  %p509_p10 = scmp.lt.s32.totalorder (!%p451_p9), %s2118_s22, 1 }
  0x16   : > { %454 = sbr.rel (%p451_p9) target bundleno = 2223 (0x8af), region = 68  ;;  %s2568_s1 = sld [smem:[#allocation14_spill]] (!%p451_p9) }
  0x17   : > { %s2569_s0 = sld [smem:[#allocation13_spill]] (!%p451_p9)  ;;  %s2466_s27 = sand.u32 (!%p451_p9), 1, %s2002_s19  }
  0x18   : > { %s2570_s2 = sld [smem:[#allocation15_spill]] (!%p451_p9)  ;;  %s2557_s16 = sshll.u32 (!%p451_p9), %s2118_s22, 4 }
  0x19   : > { %s1443_s26 = scalar_lea.sflag (!%p451_p9), [#allocation5], %s2466_s27  ;;  %s2015_s29 = smov (!%p451_p9), [#allocation4]  }
  0x1b   : > { %s2165_s23 = scalar_select %p509_p10, %s2118_s22, 1  ;;  %v1638_v34 = vld [vmem:[%s2539_s3] ss:$0 sm:$0xff]  ;;  %vm2013_vm0 = vmmov 0   ;;  %vm855_vm1 = vcmask 130112   ;;  %vm884_vm2 = vcmask 1041409  }
  0x1c   : > { %v1858_v0 = vld [vmem:[%s2568_s1 + $0x78] sm:$0xff]   ;;  %v1860_v2 = vld [vmem:[%s2568_s1 + $0x70] sm:$0xff]   ;;  %v1862_v4 = vld [vmem:[%s2568_s1 + $0x68] sm:$0xff]   ;;  %vm886_vm3 = vcmask 1042434   ;;  %vm888_vm4 = vcmask 1043459   ;;  %vm890_vm5 = vcmask 130048  }
  0x1d   : > { %v1859_v1 = vld [vmem:[%s2568_s1 + $0x38] sm:$0xff]   ;;  %1648 = vmatprep.subr.bf16.mxu0 %v1858_v0  ;;  %v1861_v3 = vld [vmem:[%s2568_s1 + $0x30] sm:$0xff]   ;;  %v1863_v5 = vld [vmem:[%s2568_s1 + $0x28] sm:$0xff]   ;;  %s1647_s30 = sshll.u32 %s2165_s23, 6  ;;  %vm963_vm6 = vcmask 125952   ;;  %s1611_s24 = sshll.u32 %s2165_s23, 2 }
  0x1e   : > { %1649 = vmatpush3.bf16.msra.mxu0 %v1859_v1  ;;  %v1864_v6 = vld [vmem:[%s2568_s1 + $0x60] sm:$0xff]   ;;  %v1866_v8 = vld [vmem:[%s2568_s1 + $0x58] sm:$0xff]   ;;  %s2180_s18 = scalar_lea.vmem %s2569_s0, %s1647_s30  ;;  %v1868_v10 = vld [vmem:[%s2568_s1 + $0x50] sm:$0xff]   ;;  %s517_s25 = scalar_lea.vmem %s2549_s13, %s1611_s24  ;;  %vm1179_vm7 = vcmask 1043456   ;;  %vm1250_vm8 = vcmask 27648   ;;  %vm1263_vm9 = vcmask 31744  }
  0x1f   : > { %1650 = vmatprep.subr.bf16.mxu0 %v1860_v2  ;;  %v1865_v7 = vld [vmem:[%s2568_s1 + $0x20] sm:$0xff]   ;;  %v1867_v9 = vld [vmem:[%s2568_s1 + $0x18] sm:$0xff]   ;;  %v1869_v12 = vld [vmem:[%s2568_s1 + $0x10] sm:$0xff]   ;;  %vm1261_vm10 = vcmask 24576   ;;  %s508_s23 = scalar_lea.vmem [#allocation4], %s2466_s27 }
  0x20   : > { %v1876_v11 = vld [vmem:[%s2180_s18 + $0x4] ss:$8 sps:$4 sm:$0xff]   ;;  %v1874_v17 = vld [vmem:[%s2180_s18] ss:$8 sps:$4 sm:$0xff]   ;;  %v1877_v18 = vld [vmem:[%s2180_s18 + $0x14] ss:$8 sps:$4 sm:$0xff]  }
  0x21   : > { %738 = vmatprep.mubr.bf16.mxu0 %v1876_v11  ;;  %v1870_v13 = vld [vmem:[%s2568_s1 + $0x48] sm:$0xff]   ;;  %v1872_v15 = vld [vmem:[%s2568_s1 + $0x40] sm:$0xff]   ;;  %v1879_v19 = vld [vmem:[%s2180_s18 + $0x10] ss:$8 sps:$4 sm:$0xff]  }
  0x22   : > { %1651 = vmatpush3.bf16.msra.mxu0 %v1861_v3  ;;  %v1871_v14 = vld [vmem:[%s2568_s1 + $0x8] sm:$0xff]   ;;  %v1873_v16 = vld [vmem:[%s2568_s1] sm:$0xff]   ;;  %v1883_v22 = vld [vmem:[%s2180_s18 + $0x34] ss:$8 sps:$4 sm:$0xff]  }
  0x23   : > { %1652 = vmatprep.subr.bf16.mxu0 %v1862_v4  ;;  %v1880_v20 = vld [vmem:[%s2180_s18 + $0x24] ss:$8 sps:$4 sm:$0xff]   ;;  %v1882_v21 = vld [vmem:[%s2180_s18 + $0x20] ss:$8 sps:$4 sm:$0xff]   ;;  %v1885_v23 = vld [vmem:[%s2180_s18 + $0x30] ss:$8 sps:$4 sm:$0xff]   ;;  %s521_s18 = scalar_lea.vmem %s2550_s14, %s1611_s24 }
  0x24   : > { %v1613_v25 = vld [vmem:[%s2570_s2] ss:$0 sm:$0xff]  ;;  %s1924_s24 = sshll.u32 %s2015_s29, 4  ;;  %s1925_s24 = int_to_ptr.vmem [resolvable:$false] %s1924_s24 }
  0x25   : > { %s1926_s0 = scalar_lea.vmem %s1925_s24, 32 }
  0x26   : > { %1653 = vmatpush3.bf16.msra.mxu0 %v1863_v5 }
  0x27   : > { %1654 = vmatprep.subr.bf16.mxu0 %v1864_v6 }
  0x2a   : > { %1655 = vmatpush3.bf16.msra.mxu0 %v1865_v7 }
  0x2b   : > { %1656 = vmatprep.subr.bf16.mxu0 %v1866_v8 }
  0x2e   : > { %1657 = vmatpush3.bf16.msra.mxu0 %v1867_v9 }
  0x2f   : > { %1658 = vmatprep.subr.bf16.mxu0 %v1868_v10 }
  0x32   : > { %1659 = vmatpush3.bf16.msra.mxu0 %v1869_v12 }
  0x33   : > { %1660 = vmatprep.subr.bf16.mxu0 %v1870_v13 }
  0x36   : > { %1661 = vmatpush3.bf16.msra.mxu0 %v1871_v14 }
  0x37   : > { %1662 = vmatprep.subr.bf16.mxu0 %v1872_v15 }
  0x3a   : > { %1663 = vmatpush3.bf16.msra.mxu0 %v1873_v16 }
  0x3d   : > { %739 = vmatmul.mubr.bf16.vlgmr.msra.gmra.mxu0 %v1874_v17 }
  0x3e   : > { %746 = vmatprep.mubr.bf16.mxu0 %v1877_v18  ;;  %v835_v18 = vld [vmem:[%s2540_s4 + $0x8] sm:$0xff] }
  0x45   : > { %747 = vmatmul.mubr.bf16.gmra.mxu0 %v1879_v19  ;;  %v2012_v19 = vmov 0.0  }
  0x46   : > { %754 = vmatprep.mubr.bf16.mxu0 %v1880_v20  ;;  %1727 = vmatprep.subr.mxu1 %v2012_v19  ;;  %v834_v20 = vld [vmem:[%s2540_s4] sm:$0xff] }
  0x47   : > { %1731 = vmatprep.mubr.msk.f32.mxu1 %vm2013_vm0, %v2012_v19  ;;  %1728 = vmatpush3.msra.mxu1 %v835_v18 }
  0x48   : > { %1774 = vmatprep.subr.mxu0 %v2012_v19  ;;  %1729 = vmatprep.subr.mxu1 %v2012_v19 }
  0x49   : > { %1730 = vmatpush3.msra.mxu1 %v834_v20 }
  0x4a   : > { %1734 = vmatprep.subr.mxu1 %v2012_v19 }
  0x4d   : > { %755 = vmatmul.mubr.bf16.gmra.mxu0 %v1882_v21 }
  0x4e   : > { %762 = vmatprep.mubr.bf16.mxu0 %v1883_v22 }
  0x55   : > { %763 = vmatmul.mubr.bf16.gmra.mxu0 %v1885_v23 }
  0x56   : > { %1806 = vmatprep.mubr.msk.f32.mxu0 %vm2013_vm0, %v2012_v19 }
  0xfd   : > { %v1664_v24 = vpop.f32.mrf.mxu0 }
  0xff   : > { %v1665_v26 = vpop.f32.mrf.mxu0 }
 0x100   : > { %v1666_v27 = vadd.f32 %v1665_v26, %v1664_v24 }
 0x101   : > { %v1667_v28 = vpop.f32.mrf.mxu0 }
 0x102   : > { %v741_v29 = vadd.f32 %v1666_v27, %v1613_v25 }
 0x103   : > { %v1668_v30 = vpop.f32.mrf.mxu0 }
 0x104   : > { %v1669_v31 = vadd.f32 %v1668_v30, %v1667_v28  ;;  %v2214_v32 = vmul.f32 0.999995, %v741_v29 }
 0x105   : > { %v1670_v33 = vpop.f32.mrf.mxu0 }
 0x106   : > { %v744_v35 = vadd.f32 %v1669_v31, %v1613_v25  ;;  %v779_v36 = vmax.f32 %v2214_v32, 0.0 }
 0x107   : > { %v1671_v37 = vpop.f32.mrf.mxu0 }
 0x108   : > { %v2220_v38 = vmul.f32 0.999995, %v744_v35  ;;  %v1672_v39 = vadd.f32 %v1671_v37, %v1670_v33  ;;  %v794_v40 = vmul.f32 %v1638_v34, %v779_v36  ;;  %v844_v37 = vlaneseq }
 0x109   : > { %v1673_v41 = vpop.f32.mrf.mxu0 }
 0x10a   : > { %v749_v42 = vadd.f32 %v1672_v39, %v1613_v25  ;;  %802 = vadd.xlane.f32.xlu0 %v794_v40  ;;  %v780_v43 = vmax.f32 %v2220_v38, 0.0 }
 0x10b   : > { %v1674_v44 = vpop.f32.mrf.mxu0 }
 0x10c   : > { %v1675_v45 = vadd.f32 %v1674_v44, %v1673_v41  ;;  %v795_v46 = vmul.f32 %v1638_v34, %v780_v43  ;;  %v2227_v47 = vmul.f32 0.999995, %v749_v42  ;;  %v845_v41 = vand.u32 127, %v844_v37 }
 0x10d   : > { %v1676_v48 = vpop.f32.mrf.mxu0 }
 0x10e   : > { %v752_v49 = vadd.f32 %v1675_v45, %v1613_v25  ;;  %804 = vadd.xlane.f32.xlu0 %v795_v46  ;;  %v781_v50 = vmax.f32 %v2227_v47, 0.0  ;;  %v850_v42 = vadd.s32 4294967288, %v845_v41  ;;  %v2271_v45 = vshrl.u32 %v844_v37, 7 }
 0x10f   : > { %v1677_v51 = vpop.f32.mrf.mxu0 }
 0x110   : > { %v2230_v52 = vmul.f32 0.999995, %v752_v49  ;;  %v1678_v53 = vadd.f32 %v1677_v51, %v1676_v48  ;;  %v796_v54 = vmul.f32 %v1638_v34, %v781_v50  ;;  %v853_v49 = vsub.s32 %v850_v42, %v2271_v45 }
 0x111   : > { %v1679_v55 = vpop.f32.mrf.mxu0 }
 0x112   : > { %v757_v56 = vadd.f32 %v1678_v53, %v1613_v25  ;;  %806 = vadd.xlane.f32.xlu1 %v796_v54  ;;  %v782_v57 = vmax.f32 %v2230_v52, 0.0  ;;  %v848_v54 = vsub.s32 %v845_v41, %v2271_v45  ;;  %v990_v41 = vsub.s32 1, %v2271_v45 }
 0x113   : > { %v1680_v58 = vpop.f32.mrf.mxu0 }
 0x114   : > { %v2235_v59 = vmul.f32 0.999995, %v757_v56  ;;  %v1681_v60 = vadd.f32 %v1680_v58, %v1679_v55  ;;  %v797_v61 = vmul.f32 %v1638_v34, %v782_v57 }
 0x115   : > { %v1682_v62 = vpop.f32.mrf.mxu0 }
 0x116   : > { %v760_v63 = vadd.f32 %v1681_v60, %v1613_v25  ;;  %808 = vadd.xlane.f32.xlu1 %v797_v61  ;;  %v783_v0 = vmax.f32 %v2235_v59, 0.0 }
 0x117   : > { %v1683_v1 = vpop.f32.mrf.mxu0 }
 0x118   : > { %v2240_v2 = vmul.f32 0.999995, %v760_v63  ;;  %v1684_v3 = vadd.f32 %v1683_v1, %v1682_v62  ;;  %v798_v4 = vmul.f32 %v1638_v34, %v783_v0 }
 0x119   : > { %v1685_v5 = vpop.f32.mrf.mxu0 }
 0x11a   : > { %v765_v6 = vadd.f32 %v1684_v3, %v1613_v25  ;;  %810 = vadd.xlane.f32.xlu0 %v798_v4  ;;  %v784_v7 = vmax.f32 %v2240_v2, 0.0 }
 0x11b   : > { %v1686_v8 = vpop.f32.mrf.mxu0 }
 0x11c   : > { %v2245_v9 = vmul.f32 0.999995, %v765_v6  ;;  %v1687_v10 = vadd.f32 %v1686_v8, %v1685_v5  ;;  %v799_v11 = vmul.f32 %v1638_v34, %v784_v7 }
 0x11e   : > { %v768_v12 = vadd.f32 %v1687_v10, %v1613_v25  ;;  %812 = vadd.xlane.f32.xlu1 %v799_v11  ;;  %v785_v13 = vmax.f32 %v2245_v9, 0.0 }
 0x120   : > { %v2250_v14 = vmul.f32 0.999995, %v768_v12  ;;  %v800_v15 = vmul.f32 %v1638_v34, %v785_v13 }
 0x122   : > { %814 = vadd.xlane.f32.xlu0 %v800_v15  ;;  %v786_v16 = vmax.f32 %v2250_v14, 0.0 }
 0x124   : > { %v801_v17 = vmul.f32 %v1638_v34, %v786_v16 }
 0x126   : > { %816 = vadd.xlane.f32.xlu1 %v801_v17 }
 0x193   : > { %v803_v21 = vpop.xlane.xlu0 %802 }
 0x194   : > { %v818_v33 = vmul.f32 0.999995, %v803_v21 }
 0x197   : > { %v805_v23 = vpop.xlane.xlu0 %804 }
 0x198   : > { %v819_v25 = vmul.f32 0.999995, %v805_v23 }
 0x19a   : > { %1886 = vtanh.f32 %v819_v25 }
 0x19b   : > { %v807_v22 = vpop.xlane.xlu1 %806 }
 0x19c   : > { %v820_v29 = vmul.f32 0.999995, %v807_v22 }
 0x19f   : > { %v809_v24 = vpop.xlane.xlu1 %808 }
 0x1a0   : > { %v821_v26 = vmul.f32 0.999995, %v809_v24 }
 0x1a2   : > { %1888 = vtanh.f32 %v821_v26 }
 0x1a3   : > { %v811_v27 = vpop.xlane.xlu0 %810 }
 0x1a4   : > { %v822_v31 = vmul.f32 0.999995, %v811_v27  ;;  %v1029_v27 = vld [vmem:[%s2541_s5] sm:$0xff] }
 0x1a7   : > { %v813_v28 = vpop.xlane.xlu1 %812  ;;  %v1887_v44 = vpop.eup %1886 }
 0x1a8   : > { %v823_v30 = vmul.f32 0.999995, %v813_v28  ;;  %v854_v60 = vrot.slane %v1887_v44, %v853_v49  ;;  %v2014_v28 = vmov 0   ;;  %v1001_v44 = vsub.s32 2, %v2271_v45 }
 0x1a9   : > { %1857 = vset.pattern.permute.xlu1 %v2014_v28  ;;  %1856 = vset.pattern.permute.xlu0 %v2014_v28 }
 0x1aa   : > { %1890 = vtanh.f32 %v823_v30 }
 0x1ab   : > { %v815_v34 = vpop.xlane.xlu0 %814  ;;  %1892 = vtanh.f32 %v820_v29  ;;  %v1030_v29 = vld [vmem:[%s2541_s5 + $0x8] sm:$0xff] }
 0x1ac   : > { %v824_v35 = vmul.f32 0.999995, %v815_v34  ;;  %1894 = vtanh.f32 %v822_v31  ;;  %v1012_v34 = vsub.s32 3, %v2271_v45 }
 0x1ad   : > { %1896 = vtanh.f32 %v818_v33 }
 0x1ae   : > { %1898 = vtanh.f32 %v824_v35  ;;  %v979_v35 = vsub.s32 0, %v2271_v45  ;;  %v1098_v45 = vld [vmem:[%s2542_s6 + $0x68] sm:$0xff] }
 0x1af   : > { %v817_v39 = vpop.xlane.xlu1 %816  ;;  %v1889_v46 = vpop.eup %1888 }
 0x1b0   : > { %v825_v40 = vmul.f32 0.999995, %v817_v39  ;;  %v864_v55 = vrot.slane %v1889_v46, %v853_v49 }
 0x1b2   : > { %1900 = vtanh.f32 %v825_v40 }
 0x1b7   : > { %v1891_v48 = vpop.eup %1890 }
 0x1b8   : > { %v1893_v51 = vpop.eup %1892  ;;  %v873_v58 = vrot.slane %v1891_v48, %v853_v49  ;;  %v1100_v48 = vld [vmem:[%s2542_s6 + $0x78] sm:$0xff] }
 0x1b9   : > { %v1895_v53 = vpop.eup %1894  ;;  %v860_v61 = vrot.slane %v1893_v51, %v848_v54  ;;  %v1097_v51 = vld [vmem:[%s2542_s6 + $0x60] sm:$0xff] }
 0x1ba   : > { %v1897_v56 = vpop.eup %1896  ;;  %v869_v63 = vrot.slane %v1895_v53, %v848_v54  ;;  %v1096_v53 = vld [vmem:[%s2542_s6 + $0x58] sm:$0xff] }
 0x1bb   : > { %v1899_v62 = vpop.eup %1898  ;;  %v849_v1 = vrot.slane %v1897_v56, %v848_v54  ;;  %v865_v3 = vsel %vm855_vm1, %v864_v55, %v860_v61  ;;  %v1094_v55 = vld [vmem:[%s2542_s6 + $0x48] sm:$0xff]  ;;  %v1093_v56 = vld [vmem:[%s2542_s6 + $0x40] sm:$0xff] }
 0x1bc   : > { %v874_v5 = vsel %vm855_vm1, %v873_v58, %v869_v63  ;;  %v878_v8 = vrot.slane %v1899_v62, %v848_v54  ;;  %v1095_v54 = vld [vmem:[%s2542_s6 + $0x50] sm:$0xff]  ;;  %v1092_v58 = vld [vmem:[%s2542_s6 + $0x38] sm:$0xff]  ;;  %v1090_v61 = vld [vmem:[%s2542_s6 + $0x28] sm:$0xff] }
 0x1bd   : > { %v856_v6 = vsel %vm855_vm1, %v854_v60, %v849_v1  ;;  %v1091_v60 = vld [vmem:[%s2542_s6 + $0x30] sm:$0xff]  ;;  %v1089_v62 = vld [vmem:[%s2542_s6 + $0x20] sm:$0xff]  ;;  %v1088_v63 = vld [vmem:[%s2542_s6 + $0x18] sm:$0xff] }
 0x1be   : > { %v885_v11 = vsel %vm884_vm2, %v865_v3, %v856_v6  ;;  %v1087_v1 = vld [vmem:[%s2542_s6 + $0x10] sm:$0xff]  ;;  %v1086_v3 = vld [vmem:[%s2542_s6 + $0x8] sm:$0xff] }
 0x1bf   : > { %v1901_v4 = vpop.eup %1900  ;;  %v887_v15 = vsel %vm886_vm3, %v874_v5, %v885_v11 }
 0x1c0   : > { %v882_v10 = vrot.slane %v1901_v4, %v853_v49  ;;  %v1099_v49 = vld [vmem:[%s2542_s6 + $0x70] sm:$0xff]  ;;  %v1085_v4 = vld [vmem:[%s2542_s6] sm:$0xff] }
 0x1c2   : > { %v883_v12 = vsel %vm855_vm1, %v882_v10, %v878_v8 }
 0x1c3   : > { %v889_v17 = vsel %vm888_vm4, %v883_v12, %v887_v15 }
 0x1c4   : > { %1732 = vmatmul.mubr.msk.f32.vlgmr.msra.gmra.mxu1 %vm890_vm5, %v889_v17 }
 0x1c5   : > { %1766 = vmatprep.mubr.msk.f32.mxu1 %vm2013_vm0, %v2012_v19  ;;  %1735 = vmatpush3.msra.mxu1 %v1100_v48 }
 0x1c6   : > { %1736 = vmatprep.subr.mxu1 %v2012_v19 }
 0x1c7   : > { %1737 = vmatpush3.msra.mxu1 %v1099_v49 }
 0x1c8   : > { %1738 = vmatprep.subr.mxu1 %v2012_v19 }
 0x1c9   : > { %1739 = vmatpush3.msra.mxu1 %v1098_v45 }
 0x1ca   : > { %1740 = vmatprep.subr.mxu1 %v2012_v19 }
 0x1cb   : > { %1741 = vmatpush3.msra.mxu1 %v1097_v51 }
 0x1cc   : > { %1742 = vmatprep.subr.mxu1 %v2012_v19 }
 0x1cd   : > { %1743 = vmatpush3.msra.mxu1 %v1096_v53 }
 0x1ce   : > { %1744 = vmatprep.subr.mxu1 %v2012_v19 }
 0x1cf   : > { %1745 = vmatpush3.msra.mxu1 %v1095_v54 }
 0x1d0   : > { %1746 = vmatprep.subr.mxu1 %v2012_v19 }
 0x1d1   : > { %1747 = vmatpush3.msra.mxu1 %v1094_v55 }
 0x1d2   : > { %1748 = vmatprep.subr.mxu1 %v2012_v19 }
 0x1d3   : > { %1749 = vmatpush3.msra.mxu1 %v1093_v56 }
 0x1d4   : > { %1750 = vmatprep.subr.mxu1 %v2012_v19 }
 0x1d5   : > { %1751 = vmatpush3.msra.mxu1 %v1092_v58 }
 0x1d6   : > { %1752 = vmatprep.subr.mxu1 %v2012_v19 }
 0x1d7   : > { %1753 = vmatpush3.msra.mxu1 %v1091_v60 }
 0x1d8   : > { %1754 = vmatprep.subr.mxu1 %v2012_v19 }
 0x1d9   : > { %1755 = vmatpush3.msra.mxu1 %v1090_v61 }
 0x1da   : > { %1756 = vmatprep.subr.mxu1 %v2012_v19 }
 0x1db   : > { %1757 = vmatpush3.msra.mxu1 %v1089_v62 }
 0x1dc   : > { %1758 = vmatprep.subr.mxu1 %v2012_v19 }
 0x1dd   : > { %1759 = vmatpush3.msra.mxu1 %v1088_v63 }
 0x1de   : > { %1760 = vmatprep.subr.mxu1 %v2012_v19 }
 0x1df   : > { %1761 = vmatpush3.msra.mxu1 %v1087_v1 }
 0x1e0   : > { %1762 = vmatprep.subr.mxu1 %v2012_v19 }
 0x1e1   : > { %1763 = vmatpush3.msra.mxu1 %v1086_v3 }
 0x1e2   : > { %1764 = vmatprep.subr.mxu1 %v2012_v19 }
 0x1e3   : > { %1765 = vmatpush3.msra.mxu1 %v1085_v4 }
 0x1e4   : > { %1769 = vmatprep.subr.mxu1 %v2012_v19 }
 0x284   : > { %v959_v18 = vpop.f32.mrf.mxu1 }
 0x285   : > { %v964_v20 = vsel %vm963_vm6, %v959_v18, -inf }
 0x286   : > { %965 = vmax.xlane.f32.xlu0 %v964_v20  ;;  %v1733_v21 = vpop.f32.mrf.mxu1 }
 0x29c   : > { %1033 = vperm.xlu0 %1856, %v1029_v27  }
 0x30f   : > { %v966_v22 = vpop.xlane.xlu0 %965 }
 0x310   : > { %v967_v23 = vsub.f32 %v959_v18, %v966_v22 }
 0x312   : > { %v968_v24 = vmul.f32 1.442695, %v967_v23 }
 0x314   : > { %1902 = vpow2.f32 %v968_v24 }
 0x317   : > { %v1034_v17 = vpop.permute.xlu0 %1033 }
 0x321   : > { %v1903_v25 = vpop.eup %1902 }
 0x322   : > { %v970_v26 = vsel %vm963_vm6, %v1903_v25, 0.0 }
 0x323   : > { %971 = vadd.xlane.f32.xlu1 %v970_v26 }
 0x334   : > { %1038 = vperm.xlu1 %1857, %v1030_v29  }
 0x3ac   : > { %v972_v30 = vpop.xlane.xlu1 %971 }
 0x3ad   : > { %1904 = vrcp.f32 %v972_v30 }
 0x3b0   : > { %v1039_v5 = vpop.permute.xlu1 %1038 }
 0x3ba   : > { %v1905_v31 = vpop.eup %1904 }
 0x3bb   : > { %v974_v33 = vmul.f32 %v1905_v31, %v1903_v25 }
 0x3bd   : > { %v975_v37 = vmul.f32 16.0, %v974_v33 }
 0x3bf   : > { %v1013_v39 = vrot.slane %v975_v37, %v1012_v34  ;;  %v980_v40 = vrot.slane %v975_v37, %v979_v35  ;;  %976 = vst.msk [vmem:[%s517_s25] sm:$0xf] %vm963_vm6, %v975_v37  ;;  %v991_v42 = vrot.slane %v975_v37, %v990_v41  ;;  %v1002_v46 = vrot.slane %v975_v37, %v1001_v44  ;;  %s1474_s25 = sshll.u32 %s508_s23, 4  ;;  %s1475_s25 = int_to_ptr.vmem [resolvable:$true] %s1474_s25 }
 0x3c0   : > { %s1920_s20 = scalar_lea.vmem %s1475_s25, 16  ;;  %p1927_p0 = scmp.lt.s32.totalorder %s1475_s25, %s1925_s24 }
 0x3c1   : > { %1019 = vbcast.lane.b32.xlu0 %v1013_v39, 264  ;;  %982 = vbcast.lane.b32.xlu1 %v980_v40, 256  ;;  %p1921_p11 = scmp.ne.s32.totalorder %s1475_s25, %s1920_s20  ;;  %p1928_p1 = scmp.lt.s32.totalorder %s1926_s0, %s1920_s20 }
 0x3c3   : > { %p1922_p12 = pnand %p1921_p11, %p2135_p5  ;;  %p1929_p2 = por %p1928_p1, %p1927_p0 }
 0x3c5   : > { %986 = vbcast.lane.b32.xlu1 %v980_v40, 264  ;;  %p1923_p13 = pneg %p1922_p12 }
 0x3c7   : > { %p1930_p3 = pnand %p1929_p2, %p1923_p13 }
 0x3c9   : > { %993 = vbcast.lane.b32.xlu1 %v991_v42, 256 }
 0x3cd   : > { %997 = vbcast.lane.b32.xlu1 %v991_v42, 264 }
 0x3d1   : > { %1004 = vbcast.lane.b32.xlu1 %v1002_v46, 256 }
 0x3d5   : > { %1008 = vbcast.lane.b32.xlu1 %v1002_v46, 264 }
 0x3d9   : > { %1015 = vbcast.lane.b32.xlu1 %v1013_v39, 256 }
 0x433   : > { %v983_v6 = vpop.permute.xlu1 %982  ;;  %v1020_v33 = vpop.permute.xlu0 %1019 }
 0x434   : > { %v1021_v10 = vmul.f32 %v983_v6, %v779_v36 }
 0x436   : > { %v1041_v20 = vmul.f32 %v1034_v17, %v1021_v10 }
 0x437   : > { %v987_v8 = vpop.permute.xlu1 %986 }
 0x438   : > { %v1022_v11 = vmul.f32 %v987_v8, %v780_v43 }
 0x43a   : > { %v1042_v12 = vmul.f32 %v1039_v5, %v1022_v11  ;;  %v1193_v15 = vadd.f32 %v1022_v11, %v1021_v10 }
 0x43b   : > { %v994_v18 = vpop.permute.xlu1 %993 }
 0x43c   : > { %v1194_v21 = vrot.slane %v1193_v15, 4  ;;  %v1049_v22 = vadd.f32 %v1042_v12, %v1041_v20  ;;  %v1023_v24 = vmul.f32 %v994_v18, %v781_v50 }
 0x43e   : > { %v1195_v23 = vadd.f32 %v1194_v21, %v1193_v15  ;;  %v1050_v36 = vrot.slane %v1049_v22, 4  ;;  %v1043_v27 = vmul.f32 %v1034_v17, %v1023_v24 }
 0x43f   : > { %v998_v25 = vpop.permute.xlu1 %997 }
 0x440   : > { %v1196_v26 = vrot.slane %v1195_v23, 2  ;;  %v1024_v32 = vmul.f32 %v998_v25, %v782_v57  ;;  %v1051_v34 = vadd.f32 %v1050_v36, %v1049_v22  ;;  %v1028_v57 = vmul.f32 %v1020_v33, %v786_v16 }
 0x442   : > { %v1044_v38 = vmul.f32 %v1039_v5, %v1024_v32  ;;  %v1200_v43 = vadd.f32 %v1024_v32, %v1023_v24  ;;  %v1197_v28 = vadd.f32 %v1196_v26, %v1195_v23  ;;  %v1052_v42 = vrot.slane %v1051_v34, 2 }
 0x443   : > { %v1005_v29 = vpop.permute.xlu1 %1004  ;;  %v1048_v55 = vmul.f32 %v1039_v5, %v1028_v57 }
 0x444   : > { %v1056_v30 = vadd.f32 %v1044_v38, %v1043_v27  ;;  %v1201_v31 = vrot.slane %v1200_v43, 4  ;;  %v1198_v39 = vrot.slane %v1197_v28, 1  ;;  %v1025_v47 = vmul.f32 %v1005_v29, %v783_v0 }
 0x445   : > { %v1053_v16 = vadd.f32 %v1052_v42, %v1051_v34 }
 0x446   : > { %v1057_v35 = vrot.slane %v1056_v30, 4  ;;  %v1202_v37 = vadd.f32 %v1201_v31, %v1200_v43  ;;  %v1199_v48 = vadd.f32 %v1198_v39, %v1197_v28  ;;  %v1045_v49 = vmul.f32 %v1034_v17, %v1025_v47 }
 0x447   : > { %v1009_v50 = vpop.permute.xlu1 %1008  ;;  %v1054_v10 = vrot.slane %v1053_v16, 1 }
 0x448   : > { %v1058_v40 = vadd.f32 %v1057_v35, %v1056_v30  ;;  %v1203_v52 = vrot.slane %v1202_v37, 2  ;;  %v1026_v41 = vmul.f32 %v1009_v50, %v784_v7  ;;  %v1222_v60 = vmul.f32 0.0625, %v1199_v48 }
 0x449   : > { %v1055_v22 = vadd.f32 %v1054_v10, %v1053_v16  ;;  %v1346_v10 = vld [vmem:[%s2546_s10 + $0x28] sm:$0xff] }
 0x44a   : > { %v1059_v44 = vrot.slane %v1058_v40, 2  ;;  %v1204_v46 = vadd.f32 %v1203_v52, %v1202_v37  ;;  %v1046_v45 = vmul.f32 %v1039_v5, %v1026_v41  ;;  %v1207_v51 = vadd.f32 %v1026_v41, %v1025_v47 }
 0x44b   : > { %v1016_v53 = vpop.permute.xlu1 %1015  ;;  %v1077_v28 = vmul.f32 0.999995, %v1055_v22 }
 0x44c   : > { %v1060_v54 = vadd.f32 %v1059_v44, %v1058_v40  ;;  %v1205_v59 = vrot.slane %v1204_v46, 1  ;;  %v1027_v0 = vmul.f32 %v1016_v53, %v785_v13  ;;  %v1063_v56 = vadd.f32 %v1046_v45, %v1045_v49 }
 0x44d   : > { %v1208_v14 = vrot.slane %v1207_v51, 4 }
 0x44e   : > { %v1206_v58 = vadd.f32 %v1205_v59, %v1204_v46  ;;  %v1047_v2 = vmul.f32 %v1034_v17, %v1027_v0  ;;  %v1214_v7 = vadd.f32 %v1028_v57, %v1027_v0  ;;  %v1064_v61 = vrot.slane %v1063_v56, 4 }
 0x44f   : > { %v1209_v62 = vadd.f32 %v1208_v14, %v1207_v51  ;;  %v1061_v63 = vrot.slane %v1060_v54, 1  ;;  %v1640_v14 = vld [vmem:[%s2543_s7] ss:$0 sm:$0xff] }
 0x450   : > { %v1223_v1 = vmul.f32 0.0625, %v1206_v58  ;;  %v1070_v3 = vadd.f32 %v1048_v55, %v1047_v2  ;;  %v1215_v4 = vrot.slane %v1214_v7, 4  ;;  %v1065_v6 = vadd.f32 %v1064_v61, %v1063_v56  ;;  %v1354_v61 = vld [vmem:[%s2546_s10 + $0x68] sm:$0xff] }
 0x451   : > { %v1210_v8 = vrot.slane %v1209_v62, 2  ;;  %v1062_v15 = vadd.f32 %v1061_v63, %v1060_v54  ;;  %v1352_v63 = vld [vmem:[%s2546_s10 + $0x58] sm:$0xff] }
 0x452   : > { %v1230_v9 = vsel %vm884_vm2, %v1223_v1, %v1222_v60  ;;  %v1071_v13 = vrot.slane %v1070_v3, 4  ;;  %v1216_v5 = vadd.f32 %v1215_v4, %v1214_v7  ;;  %v1066_v11 = vrot.slane %v1065_v6, 2  ;;  %v1356_v7 = vld [vmem:[%s2546_s10 + $0x78] sm:$0xff]  ;;  %v1355_v60 = vld [vmem:[%s2546_s10 + $0x70] sm:$0xff]  ;;  %v1349_v4 = vld [vmem:[%s2546_s10 + $0x40] sm:$0xff] }
 0x453   : > { %v1211_v12 = vadd.f32 %v1210_v8, %v1209_v62  ;;  %v1078_v32 = vmul.f32 0.999995, %v1062_v15  ;;  %1775 = vmatpush3.msra.mxu0 %v1356_v7  ;;  %v1353_v62 = vld [vmem:[%s2546_s10 + $0x60] sm:$0xff]  ;;  %v1351_v1 = vld [vmem:[%s2546_s10 + $0x50] sm:$0xff] }
 0x454   : > { %v1072_v18 = vadd.f32 %v1071_v13, %v1070_v3  ;;  %v1217_v17 = vrot.slane %v1216_v5, 2  ;;  %v1067_v20 = vadd.f32 %v1066_v11, %v1065_v6  ;;  %1776 = vmatprep.subr.mxu0 %v2012_v19  ;;  %v1350_v3 = vld [vmem:[%s2546_s10 + $0x48] sm:$0xff]  ;;  %v1348_v6 = vld [vmem:[%s2546_s10 + $0x38] sm:$0xff]  ;;  %v1347_v8 = vld [vmem:[%s2546_s10 + $0x30] sm:$0xff] }
 0x455   : > { %v1212_v21 = vrot.slane %v1211_v12, 1  ;;  %1906 = vtanh.f32 %v1078_v32  ;;  %1777 = vmatpush3.msra.mxu0 %v1355_v60  ;;  %v1344_v13 = vld [vmem:[%s2546_s10 + $0x18] sm:$0xff]  ;;  %v1342_v11 = vld [vmem:[%s2546_s10 + $0x8] sm:$0xff] }
 0x456   : > { %v1073_v23 = vrot.slane %v1072_v18, 2  ;;  %v1218_v24 = vadd.f32 %v1217_v17, %v1216_v5  ;;  %v1068_v25 = vrot.slane %v1067_v20, 1  ;;  %1778 = vmatprep.subr.mxu0 %v2012_v19  ;;  %v1343_v5 = vld [vmem:[%s2546_s10 + $0x10] sm:$0xff] }
 0x457   : > { %v1213_v26 = vadd.f32 %v1212_v21, %v1211_v12  ;;  %1779 = vmatpush3.msra.mxu0 %v1354_v61 }
 0x458   : > { %v1074_v36 = vadd.f32 %v1073_v23, %v1072_v18  ;;  %v1219_v27 = vrot.slane %v1218_v24, 1  ;;  %v1069_v38 = vadd.f32 %v1068_v25, %v1067_v20  ;;  %1780 = vmatprep.subr.mxu0 %v2012_v19  ;;  %v1248_v18 = vld [vmem:[%s2544_s8] sm:$0xf] }
 0x459   : > { %v1224_v43 = vmul.f32 0.0625, %v1213_v26  ;;  %1781 = vmatpush3.msra.mxu0 %v1353_v62 }
 0x45a   : > { %v1075_v29 = vrot.slane %v1074_v36, 1  ;;  %v1220_v30 = vadd.f32 %v1219_v27, %v1218_v24  ;;  %v1079_v31 = vmul.f32 0.999995, %v1069_v38  ;;  %1782 = vmatprep.subr.mxu0 %v2012_v19  ;;  %v1341_v38 = vld [vmem:[%s2546_s10] sm:$0xff] }
 0x45b   : > { %v1231_v33 = vsel %vm886_vm3, %v1224_v43, %v1230_v9  ;;  %1783 = vmatpush3.msra.mxu0 %v1352_v63  ;;  %v1345_v9 = vld [vmem:[%s2546_s10 + $0x20] sm:$0xff] }
 0x45c   : > { %v1076_v34 = vadd.f32 %v1075_v29, %v1074_v36  ;;  %v1225_v35 = vmul.f32 0.0625, %v1220_v30  ;;  %1908 = vtanh.f32 %v1079_v31  ;;  %1784 = vmatprep.subr.mxu0 %v2012_v19 }
 0x45d   : > { %1910 = vtanh.f32 %v1077_v28  ;;  %1785 = vmatpush3.msra.mxu0 %v1351_v1 }
 0x45e   : > { %v1080_v37 = vmul.f32 0.999995, %v1076_v34  ;;  %v1232_v39 = vsel %vm888_vm4, %v1225_v35, %v1231_v33  ;;  %1786 = vmatprep.subr.mxu0 %v2012_v19 }
 0x45f   : > { %1787 = vmatpush3.msra.mxu0 %v1350_v3 }
 0x460   : > { %1912 = vtanh.f32 %v1080_v37  ;;  %1788 = vmatprep.subr.mxu0 %v2012_v19 }
 0x461   : > { %1789 = vmatpush3.msra.mxu0 %v1349_v4 }
 0x462   : > { %v1907_v47 = vpop.eup %1906  ;;  %1790 = vmatprep.subr.mxu0 %v2012_v19 }
 0x463   : > { %1791 = vmatpush3.msra.mxu0 %v1348_v6 }
 0x464   : > { %1792 = vmatprep.subr.mxu0 %v2012_v19 }
 0x465   : > { %1793 = vmatpush3.msra.mxu0 %v1347_v8 }
 0x466   : > { %1794 = vmatprep.subr.mxu0 %v2012_v19 }
 0x467   : > { %1795 = vmatpush3.msra.mxu0 %v1346_v10 }
 0x468   : > { %1796 = vmatprep.subr.mxu0 %v2012_v19 }
 0x469   : > { %v1909_v50 = vpop.eup %1908  ;;  %1797 = vmatpush3.msra.mxu0 %v1345_v9 }
 0x46a   : > { %v1911_v40 = vpop.eup %1910  ;;  %1798 = vmatprep.subr.mxu0 %v2012_v19 }
 0x46b   : > { %v1105_v52 = vsel %vm884_vm2, %v1907_v47, %v1911_v40  ;;  %1799 = vmatpush3.msra.mxu0 %v1344_v13 }
 0x46c   : > { %v1106_v41 = vsel %vm886_vm3, %v1909_v50, %v1105_v52  ;;  %1800 = vmatprep.subr.mxu0 %v2012_v19 }
 0x46d   : > { %v1913_v57 = vpop.eup %1912  ;;  %1801 = vmatpush3.msra.mxu0 %v1343_v5 }
 0x46e   : > { %v1107_v42 = vsel %vm888_vm4, %v1913_v57, %v1106_v41  ;;  %1802 = vmatprep.subr.mxu0 %v2012_v19 }
 0x46f   : > { %1767 = vmatmul.mubr.f32.vlgmr.msra.gmra.mxu1 %v1107_v42  ;;  %1803 = vmatpush3.msra.mxu0 %v1342_v11 }
 0x470   : > { %1771 = vmatprep.mubr.msk.f32.mxu1 %vm2013_vm0, %v2012_v19  ;;  %1804 = vmatprep.subr.mxu0 %v2012_v19  ;;  %v1258_v19 = vld [vmem:[%s2545_s9] sm:$0x1] }
 0x471   : > { %1805 = vmatpush3.msra.mxu0 %v1341_v38 }
 0x52f   : > { %v1175_v44 = vpop.f32.mrf.mxu1 }
 0x530   : > { %v1180_v46 = vsel %vm1179_vm7, %v1175_v44, -inf }
 0x531   : > { %1181 = vmax.xlane.f32.xlu1 %v1180_v46  ;;  %v1768_v48 = vpop.f32.mrf.mxu1 }
 0x5ba   : > { %v1182_v49 = vpop.xlane.xlu1 %1181 }
 0x5bb   : > { %v1183_v45 = vsub.f32 %v1175_v44, %v1182_v49 }
 0x5bd   : > { %v1184_v51 = vmul.f32 1.442695, %v1183_v45 }
 0x5bf   : > { %1914 = vpow2.f32 %v1184_v51 }
 0x5cc   : > { %v1915_v53 = vpop.eup %1914 }
 0x5cd   : > { %v1186_v54 = vsel %vm1179_vm7, %v1915_v53, 0.0 }
 0x5ce   : > { %1187 = vadd.xlane.f32.xlu0 %v1186_v54 }
 0x657   : > { %v1188_v59 = vpop.xlane.xlu0 %1187 }
 0x658   : > { %1916 = vrcp.f32 %v1188_v59 }
 0x665   : > { %v1917_v0 = vpop.eup %1916 }
 0x666   : > { %v1190_v55 = vmul.f32 %v1917_v0, %v1915_v53 }
 0x668   : > { %v1191_v56 = vmul.f32 128.0, %v1190_v55 }
 0x66a   : > { %1192 = vst [vmem:[%s521_s18] sm:$0xf] %v1191_v56  ;;  %v1234_v16 = vmul.f32 %v1232_v39, %v1191_v56  ;;  %s1472_s18 = scalar_lea.hbm %s2551_s15, %s2557_s16 }
 0x66c   : > { %1770 = vmatpush3.msk.msra.mxu1 %vm1179_vm7, %v1234_v16  ;;  %v1242_v58 = vmul.f32 %v1640_v14, %v1234_v16 }
 0x66e   : > { %v1243_v2 = vsel %vm1179_vm7, %v1242_v58, 0.0 }
 0x66f   : > { %1244 = vadd.xlane.f32.xlu0 %v1243_v2 }
 0x6f8   : > { %v1245_v12 = vpop.xlane.xlu0 %1244 }
 0x6f9   : > { %v1246_v15 = vmul.f32 0.999995, %v1245_v12 }
 0x6fb   : > { %1918 = vtanh.f32 %v1246_v15 }
 0x708   : > { %v1919_v17 = vpop.eup %1918 }
 0x709   : > { %v1249_v20 = vmul.f32 %v1919_v17, %v1248_v18 }
 0x70b   : > { %v1251_v21 = vsel %vm1250_vm8, %v1249_v20, 0.0 }
 0x70c   : > { %v1252_v22 = vrot.slane %v1251_v21, 4 }
 0x70e   : > { %v1253_v23 = vadd.f32 %v1252_v22, %v1251_v21 }
 0x710   : > { %v1254_v24 = vrot.slane %v1253_v23, 2 }
 0x712   : > { %v1255_v25 = vadd.f32 %v1254_v24, %v1253_v23 }
 0x714   : > { %v1256_v26 = vrot.slane %v1255_v25, 1 }
 0x716   : > { %v1257_v32 = vadd.f32 %v1256_v26, %v1255_v25 }
 0x718   : > { %v1259_v36 = vadd.f32 %v1258_v19, %v1257_v32 }
 0x71a   : > { %v1260_v27 = vmax.f32 %v1259_v36, 0.0 }
 0x71c   : > { %1772 = vmatmul.mubr.msk.f32.vlgmr.msra.gmra.mxu1 %vm1263_vm9, %v1260_v27  ;;  %1262 = vst.msk [vmem:[%s508_s23] sm:$0x1] %vm1261_vm10, %v1260_v27 }
 0x7dc   : > { %v1336_v43 = vpop.f32.mrf.mxu1 }
 0x7dd   : > { %v1340_v28 = vmul.f32 0.25, %v1336_v43 }
 0x7de   : > { %v1773_v29 = vpop.f32.mrf.mxu1 }
 0x7df   : > { %1807 = vmatmul.mubr.f32.vlgmr.msra.gmra.mxu0 %v1340_v28 }
 0x7e0   : > { %1933 = shalt.err (!%p1930_p3)
}
 0x7e1   : > { %s1934_s1 = scalar_lea.hbm %s1472_s18, 16  ;;  %s1938_s17 = scalar_lea.hbm %s2551_s15, 32 }
 0x7e2   : > { %p1935_p4 = scmp.ne.s32.totalorder %s1472_s18, %s1934_s1  ;;  %p1939_p9 = scmp.lt.s32.totalorder %s1472_s18, %s2551_s15 }
 0x7e3   : > { %p1940_p10 = scmp.lt.s32.totalorder %s1938_s17, %s1934_s1 }
 0x7e4   : > { %p1936_p7 = pnand %p1935_p4, %p2135_p5 }
 0x7e5   : > { %p1941_p11 = por %p1940_p10, %p1939_p9 }
 0x7e6   : > { %p1937_p8 = pneg %p1936_p7 }
 0x7e8   : > { %p1942_p12 = pnand %p1941_p11, %p1937_p8 }
 0x7ea   : > { %1945 = shalt.err (!%p1942_p12)
}
 0x7eb   : > { %1810 = dma.vmem_to_hbm [thread:$0]  (%p2135_p5), %s1475_s25, 16, %s1472_s18, %s1443_s26   ;;  %v1357_v30 = vld [vmem:[%s2547_s11] sm:$0x1]  ;;  %vm1428_vm11 = vcmask 57344  }
 0x7ec   : > { %s490_s29 = scalar_lea.vmem [#allocation2], %s2466_s27  ;;  %s2571_s1 = sshll.u32 %s2118_s22, 4 }
 0x7ed   : > { %s1455_s24 = sshll.u32 %s490_s29, 4  ;;  %s2500_s23 = scalar_lea.hbm %s2548_s12, %s2571_s1  ;;  %s1456_s24 = int_to_ptr.vmem [resolvable:$true] %s1455_s24 }
 0x7ee   : > { %s1431_s30 = scalar_lea.sflag [#allocation3], %s2466_s27  ;;  %s1946_s18 = scalar_lea.vmem %s1456_s24, 16 }
 0x7ef   : > { %p1947_p13 = scmp.ne.s32.totalorder %s1456_s24, %s1946_s18  ;;  %s2016_s25 = smov [#allocation2]  }
 0x7f0   : > { %s1950_s26 = sshll.u32 %s2016_s25, 4  ;;  %s1951_s26 = int_to_ptr.vmem [resolvable:$false] %s1950_s26 }
 0x7f1   : > { %p1948_p0 = pnand %p1947_p13, %p2135_p5  ;;  %s1952_s17 = scalar_lea.vmem %s1951_s26, 32 }
 0x7f2   : > { %p1953_p2 = scmp.lt.s32.totalorder %s1456_s24, %s1951_s26  ;;  %p1954_p3 = scmp.lt.s32.totalorder %s1952_s17, %s1946_s18 }
 0x7f3   : > { %p1949_p1 = pneg %p1948_p0 }
 0x7f4   : > { %p1955_p4 = por %p1954_p3, %p1953_p2 }
 0x7f6   : > { %p1956_p7 = pnand %p1955_p4, %p1949_p1 }
 0x89f   : > { %v1424_v31 = vpop.f32.mrf.mxu0 }
 0x8a0   : > { %v1425_v33 = vadd.f32 %v1424_v31, %v1357_v30 }
 0x8a1   : > { %v1808_v34 = vpop.f32.mrf.mxu0 }
 0x8a2   : > { %1429 = vst.msk [vmem:[%s490_s29] sm:$0x1] %vm1428_vm11, %v1425_v33 }
 0x8a3   : > { %1959 = shalt.err (!%p1956_p7)
}
 0x8a4   : > { %s1960_s22 = scalar_lea.hbm %s2500_s23, 16  ;;  %s1964_s20 = scalar_lea.hbm %s2548_s12, 32 }
 0x8a5   : > { %p1961_p8 = scmp.ne.s32.totalorder %s2500_s23, %s1960_s22  ;;  %p1965_p11 = scmp.lt.s32.totalorder %s2500_s23, %s2548_s12 }
 0x8a6   : > { %p1966_p12 = scmp.lt.s32.totalorder %s1964_s20, %s1960_s22 }
 0x8a7   : > { %p1962_p9 = pnand %p1961_p8, %p2135_p5 }
 0x8a8   : > { %p1967_p13 = por %p1966_p12, %p1965_p11 }
 0x8a9   : > { %p1963_p10 = pneg %p1962_p9 }
 0x8ab   : > { %p1968_p0 = pnand %p1967_p13, %p1963_p10 }
 0x8ad   : > { %1971 = shalt.err (!%p1968_p0)
}
 0x8ae   : > { %1809 = dma.vmem_to_hbm [thread:$0]  (%p2135_p5), %s1456_s24, 16, %s2500_s23, %s1431_s30  }
 0x8af PF: > { %s2572_s2 = sld [smem:[#allocation8_spill]]  ;;  %p1820_p1 = scmp.ge.s32.totalorder %s2010_s21, 2 }
 0x8b1   : > { %p1814_p2 = pnand %p1820_p1, %p2139_p6 }
 0x8b3   : > { %p1815_p3 = pneg %p1814_p2 }
 0x8b5   : > { %s1486_s18 = sand.u32 1, %s2572_s2  }
 0x8b6   : > { %s1487_s25 = scalar_lea.sflag [#allocation3], %s1486_s18 }
 0x8b7   : > { %1989 = dma.done.wait (%p1815_p3), %s1487_s25, 16  }
 0x8b8   : > { %1991 = vsyncadd (%p1815_p3), %s1487_s25, 4294967280  ;;  %s1509_s26 = scalar_lea.sflag [#allocation5], %s1486_s18 }
 0x8b9   : > { %1993 = dma.done.wait (%p1815_p3), %s1509_s26, 16  }
 0x8ba   : > { %1995 = vsyncadd (%p1815_p3), %s1509_s26, 4294967280  ;;  %s2574_s21 = sld [smem:[#allocation10_spill]]  ;;  %s2577_s18 = smov %s2002_s19 }
 0x8bb   : > { %s2575_s28 = sld [smem:[#allocation9_spill]] }
 0x8bc   : > { %s2576_s20 = sld [smem:[#allocation11_spill]] }
 0x8c0   : > { %p29_p5 = scmp.ge.s32.totalorder %s2574_s21, 4  }
 0x8c1   : > { %s2578_s19 = smov %s2575_s28 }
 0x8c2   :  { %31 = sbr.rel (!%p29_p5) target bundleno = 9 (0x9), region = 144 }
 0x8c7   :  { %1513 = vsyncpa [#allocation3], 1 }
 0x8c8   :  { %1515 = vsyncpa [#allocation3 + $0x1], 1 }
 0x8c9   :  { %1516 = vsyncpa [#allocation5], 1 }
 0x8ca   :  { %1518 = vsyncpa [#allocation5 + $0x1], 1 }

</bundles_post_ra>
